<compile_context>
chip_gen: v7x
topology: tpu7x:2x2x1
jax: 0.10.0
libtpu: 0.0.40
codegen_flags: <defaults>
</compile_context>

<pallas_src>
import functools

import jax
import jax.numpy as jnp
from jax.experimental import pallas as pl
from jax.experimental.pallas import tpu as pltpu


# ----------------------------------------------------------------------------
# Tiled linear:  y = x @ W + b   (bf16 in / bf16 out, f32 accumulator)
# ----------------------------------------------------------------------------
def _linear_kernel(x_ref, w_ref, b_ref, o_ref, acc_ref):
    @pl.when(pl.program_id(2) == 0)
    def _():
        acc_ref[...] = jnp.zeros_like(acc_ref)

    acc_ref[...] += jnp.dot(x_ref[...], w_ref[...],
                            preferred_element_type=jnp.float32)

    @pl.when(pl.program_id(2) == pl.num_programs(2) - 1)
    def _():
        o_ref[...] = (acc_ref[...] + b_ref[...]).astype(o_ref.dtype)


def _pick_tile(dim, cap, align):
    """Largest `align`-multiple divisor of `dim` <= cap, else the full dim.

    Returning the full dim always satisfies the (8,128) rule ("block equals
    the full array dim").
    # TODO(synk): for awkward production dims (> cap and not align-divisible)
    # pad M/N/K in the wrapper instead of falling back to a full-dim block.
    """
    if dim <= cap:
        return dim
    if dim % align:
        return dim
    t = (cap // align) * align
    while t >= align:
        if dim % t == 0:
            return t
        t -= align
    return dim


def pallas_linear(x, w, b, *, out_dtype=jnp.bfloat16,
                  tm_cap=512, tn_cap=512, tk_cap=512):
    """x: (M, K) bf16, w: (K, N) bf16, b: (N,) f32 -> (M, N) out_dtype."""
    m, k_dim = x.shape
    n = w.shape[1]
    tm = _pick_tile(m, tm_cap, 8)
    tn = _pick_tile(n, tn_cap, 128)
    tk = _pick_tile(k_dim, tk_cap, 128)
    b2 = b.reshape(1, n)
    return pl.pallas_call(
        _linear_kernel,
        out_shape=jax.ShapeDtypeStruct((m, n), out_dtype),
        grid=(m // tm, n // tn, k_dim // tk),
        in_specs=[
            pl.BlockSpec((tm, tk), lambda i, j, k: (i, k)),
            pl.BlockSpec((tk, tn), lambda i, j, k: (k, j)),
            pl.BlockSpec((1, tn), lambda i, j, k: (0, j)),
        ],
        out_specs=pl.BlockSpec((tm, tn), lambda i, j, k: (i, j)),
        scratch_shapes=[pltpu.VMEM((tm, tn), jnp.float32)],
        compiler_params=pltpu.CompilerParams(
            dimension_semantics=("parallel", "parallel", "arbitrary"),
            vmem_limit_bytes=64 * 1024 * 1024),
    )(x, w, b2)


# ----------------------------------------------------------------------------
# Attention kernel: all heads of one (batch, query-tile) per grid step, with
# the output projection fused before the final store.
# ----------------------------------------------------------------------------
def _attn_kernel(q_ref, kv_ref, madd_ref, bias_ref, wo_ref, bo_ref, o_ref,
                 o_acc, *, num_heads, head_dim):
    half = num_heads // 2
    e = num_heads * head_dim

    q = q_ref[0]          # (tq, E)  bf16, scaling pre-folded into W_q
    kv = kv_ref[0]        # (S, 2E)  bf16: [:, :E] = K, [:, E:] = V
    madd = madd_ref[0]    # (2, S)   f32 additive mask (0 / -1e30)
    madd_global = madd[0:1]   # (1, S) — key_padding_mask (global heads)
    madd_local = madd[1:2]    # (1, S) — local_mask (local heads)

    for h in range(num_heads):                 # static unroll over heads
        lo = h * head_dim
        qh = q[:, lo:lo + head_dim]            # (tq, D)
        kh = kv[:, lo:lo + head_dim]           # (S, D)
        vh = kv[:, e + lo:e + lo + head_dim]   # (S, D)

        # (tq, S) scores: contraction over D (no transpose op), f32 accumulate.
        s = jax.lax.dot_general(qh, kh, (((1,), (1,)), ((), ())),
                                preferred_element_type=jnp.float32)
        madd_row = madd_global if h < half else madd_local
        # Shared bias block: global head h and local head h reuse bias row h.
        s = s + bias_ref[h % half] + madd_row

        m = jnp.max(s, axis=-1, keepdims=True)
        p = jnp.exp(s - m)
        p = p * pl.reciprocal(jnp.sum(p, axis=-1, keepdims=True), approx=True)

        # Write this head straight into the lane-dense scratch slab (bounds
        # live ranges to one head; no trailing concatenate).
        o_acc[:, lo:lo + head_dim] = jnp.dot(
            p.astype(kv.dtype), vh, preferred_element_type=jnp.float32)

    # Fused output projection: (tq, E) @ (E, E) + b, single lane-dense store.
    out = jnp.dot(o_acc[...].astype(wo_ref.dtype), wo_ref[...],
                  preferred_element_type=jnp.float32) + bo_ref[...]
    o_ref[0] = out.astype(o_ref.dtype)


def pallas_attention(q, kv, mask_add, bias, w_o, b_o, *, num_heads, head_dim,
                     out_dtype, tq_cap=256):
    """q: (B,T,E) bf16, kv: (B,S,2E) bf16, mask_add: (B,2,S) f32,
    bias: (B*half,T,S) f32, w_o: (E,E) bf16, b_o: (E,) f32 -> (B,T,E)."""
    bsz, t, e = q.shape
    s = kv.shape[1]
    half = num_heads // 2
    tq = _pick_tile(t, tq_cap, 8)
    kernel = functools.partial(_attn_kernel, num_heads=num_heads,
                               head_dim=head_dim)
    b_o2 = b_o.reshape(1, e)
    return pl.pallas_call(
        kernel,
        out_shape=jax.ShapeDtypeStruct((bsz, t, e), out_dtype),
        grid=(bsz, t // tq),
        in_specs=[
            pl.BlockSpec((1, tq, e), lambda b, i: (b, i, 0)),        # q tile
            pl.BlockSpec((1, s, 2 * e), lambda b, i: (b, 0, 0)),     # packed KV
            pl.BlockSpec((1, 2, s), lambda b, i: (b, 0, 0)),         # masks
            pl.BlockSpec((half, tq, s), lambda b, i: (b, i, 0)),     # bias tile
            pl.BlockSpec((e, e), lambda b, i: (0, 0)),               # W_o
            pl.BlockSpec((1, e), lambda b, i: (0, 0)),               # b_o
        ],
        out_specs=pl.BlockSpec((1, tq, e), lambda b, i: (b, i, 0)),
        scratch_shapes=[pltpu.VMEM((tq, e), jnp.float32)],
        compiler_params=pltpu.CompilerParams(
            dimension_semantics=("parallel", "parallel"),
            vmem_limit_bytes=64 * 1024 * 1024),
    )(q, kv, mask_add, bias, w_o, b_o2)


# ----------------------------------------------------------------------------
# One-time parameter preparation (hoisted out of the forward path)
# ----------------------------------------------------------------------------
def prepare_params(raw, *, num_heads, scaling_factor=1):
    """Fold `scaling` into the Q projection, fuse K/V weights into one (E,2E)
    matrix, and cast weights to bf16 (biases stay f32 for the f32 accumulate).
    Raw weights are stored as (E_in, E_out), i.e. torch weight.T."""
    embed_dim = raw["q_w"].shape[0]
    head_dim = embed_dim // num_heads
    scaling = (head_dim * scaling_factor) ** (-0.5)
    return {
        "q_w": (raw["q_w"] * scaling).astype(jnp.bfloat16),
        "q_b": (raw["q_b"] * scaling).astype(jnp.float32),
        "kv_w": jnp.concatenate([raw["k_w"], raw["v_w"]],
                                axis=1).astype(jnp.bfloat16),
        "kv_b": jnp.concatenate([raw["k_b"], raw["v_b"]],
                                axis=0).astype(jnp.float32),
        "o_w": raw["o_w"].astype(jnp.bfloat16),
        "o_b": raw["o_b"].astype(jnp.float32),
    }


# ----------------------------------------------------------------------------
# Forward wrapper
# ----------------------------------------------------------------------------
def cross_multihead_attention_aug(
    prep,
    query,
    key,
    value,
    key_padding_mask=None,   # (bsz, src_len) bool, True = masked
    local_mask=None,         # (bsz, src_len) bool, True = masked
    attn_bias=None,          # (bsz * num_heads//2, tgt_len, src_len) float
    *,
    num_heads,
):
    bsz, tgt_len, embed_dim = query.shape
    src_len = key.shape[1]
    head_dim = embed_dim // num_heads
    half = num_heads // 2
    assert num_heads % 2 == 0 and head_dim * num_heads == embed_dim
    out_dtype = query.dtype

    query_b = query.astype(jnp.bfloat16)
    key_b = key.astype(jnp.bfloat16)

    # Q projection (scaling already folded into q_w / q_b).
    q = pallas_linear(query_b.reshape(bsz * tgt_len, embed_dim),
                      prep["q_w"], prep["q_b"]
                      ).reshape(bsz, tgt_len, embed_dim)

    # Fused K/V projection: one (E, 2E) matmul, packed (bsz, S, 2E) bf16.
    if key is value:
        kv = pallas_linear(key_b.reshape(bsz * src_len, embed_dim),
                           prep["kv_w"], prep["kv_b"])
    else:
        value_b = value.astype(jnp.bfloat16)
        k_p = pallas_linear(key_b.reshape(bsz * src_len, embed_dim),
                            prep["kv_w"][:, :embed_dim],
                            prep["kv_b"][:embed_dim])
        v_p = pallas_linear(value_b.reshape(bsz * src_len, embed_dim),
                            prep["kv_w"][:, embed_dim:],
                            prep["kv_b"][embed_dim:])
        kv = jnp.concatenate([k_p, v_p], axis=-1)
    kv = kv.reshape(bsz, src_len, 2 * embed_dim)

    # Tiny additive mask stack (bsz, 2, S): row 0 = key_padding (global heads),
    # row 1 = local (local heads). Finite -1e30 avoids NaN on fully masked rows.
    if key_padding_mask is None:
        key_padding_mask = jnp.zeros((bsz, src_len), dtype=bool)
    if local_mask is None:
        local_mask = jnp.zeros((bsz, src_len), dtype=bool)
    mask_add = jnp.where(jnp.stack([key_padding_mask, local_mask], axis=1),
                         jnp.float32(-1e30), jnp.float32(0.0))

    # attn_bias kept at native (bsz*half, T, S); the kernel reuses the same
    # block for the global and local head groups (matches torch semantics).
    if attn_bias is None:
        bias = jnp.zeros((bsz * half, tgt_len, src_len), dtype=jnp.float32)
    else:
        bias = attn_bias.astype(jnp.float32)

    # Attention + fused output projection.
    return pallas_attention(q, kv, mask_add, bias, prep["o_w"], prep["o_b"],
                            num_heads=num_heads, head_dim=head_dim,
                            out_dtype=out_dtype)


# ----------------------------------------------------------------------------
# Pure-JAX reference (mirrors the torch module, eval mode, f32)
# ----------------------------------------------------------------------------
def reference_forward(params, query, key, value, key_padding_mask, local_mask,
                      attn_bias, *, num_heads, scaling_factor=1):
    bsz, tgt_len, embed_dim = query.shape
    src_len = key.shape[1]
    head_dim = embed_dim // num_heads
    half = num_heads // 2
    scaling = (head_dim * scaling_factor) ** (-0.5)

    q = query @ params["q_w"] + params["q_b"]
    k = key @ params["k_w"] + params["k_b"]
    v = value @ params["v_w"] + params["v_b"]

    q = q.reshape(bsz, tgt_len, num_heads, head_dim).transpose(0, 2, 1, 3) * scaling
    k = k.reshape(bsz, src_len, num_heads, head_dim).transpose(0, 2, 1, 3)
    v = v.reshape(bsz, src_len, num_heads, head_dim).transpose(0, 2, 1, 3)

    def half_attn(qh, kh, vh, mask):
        w = jnp.einsum("bhtd,bhsd->bhts", qh, kh)
        if mask is not None:
            w = jnp.where(mask[:, None, None, :], -jnp.inf, w)
        if attn_bias is not None:
            w = w + attn_bias.reshape(bsz, half, tgt_len, src_len)
        p = jax.nn.softmax(w, axis=-1)
        return jnp.einsum("bhts,bhsd->bhtd", p, vh)

    o_g = half_attn(q[:, :half], k[:, :half], v[:, :half], key_padding_mask)
    o_l = half_attn(q[:, half:], k[:, half:], v[:, half:], local_mask)
    o = jnp.concatenate([o_g, o_l], axis=1).transpose(0, 2, 1, 3).reshape(
        bsz, tgt_len, embed_dim)
    return o @ params["o_w"] + params["o_b"]


# ----------------------------------------------------------------------------
# Main
# ----------------------------------------------------------------------------
if __name__ == "__main__":
    bsz, tgt_len, src_len = 2, 8, 16
    embed_dim, num_heads = 32, 4
    head_dim = embed_dim // num_heads
    half = num_heads // 2

    key0 = jax.random.PRNGKey(0)
    keys = jax.random.split(key0, 12)

    # Parameters stored as (E_in, E_out), i.e. torch weight.T.
    raw_params = {
        "q_w": 0.1 * jax.random.normal(keys[0], (embed_dim, embed_dim), jnp.float32),
        "q_b": 0.01 * jax.random.normal(keys[1], (embed_dim,), jnp.float32),
        "k_w": 0.1 * jax.random.normal(keys[2], (embed_dim, embed_dim), jnp.float32),
        "k_b": 0.01 * jax.random.normal(keys[3], (embed_dim,), jnp.float32),
        "v_w": 0.1 * jax.random.normal(keys[4], (embed_dim, embed_dim), jnp.float32),
        "v_b": 0.01 * jax.random.normal(keys[5], (embed_dim,), jnp.float32),
        "o_w": 0.1 * jax.random.normal(keys[6], (embed_dim, embed_dim), jnp.float32),
        "o_b": 0.01 * jax.random.normal(keys[7], (embed_dim,), jnp.float32),
    }
    prep_params = prepare_params(raw_params, num_heads=num_heads)

    query = jax.random.normal(keys[8], (bsz, tgt_len, embed_dim), jnp.float32)
    kv_in = jax.random.normal(keys[9], (bsz, src_len, embed_dim), jnp.float32)

    # Masks: True = masked (never mask an entire row).
    key_padding_mask = jnp.zeros((bsz, src_len), bool).at[1, -3:].set(True)
    local_mask = jnp.zeros((bsz, src_len), bool).at[0, :2].set(True)
    attn_bias = 0.1 * jax.random.normal(
        keys[10], (bsz * half, tgt_len, src_len), jnp.float32)

    out = cross_multihead_attention_aug(
        prep_params, query, kv_in, kv_in,
        key_padding_mask=key_padding_mask,
        local_mask=local_mask,
        attn_bias=attn_bias,
        num_heads=num_heads,
    )
    out = jax.block_until_ready(out)

    ref = reference_forward(
        raw_params, query, kv_in, kv_in, key_padding_mask, local_mask,
        attn_bias, num_heads=num_heads)

    assert out.shape == (bsz, tgt_len, embed_dim)
    # Tolerance accounts for bf16 activations/weights and the approx softmax
    # reciprocal; accumulation is f32 throughout.
    max_err = float(jnp.max(jnp.abs(out - ref)))
    assert jnp.allclose(out, ref, atol=3e-2, rtol=3e-2), max_err
    print("KERNEL_OK")
</pallas_src>

<mosaic_0001>
module attributes {stable_mosaic.version = 11 : i64} {
  func.func @_linear_kernel(%arg0: i32, %arg1: i32, %arg2: i32, %arg3: memref<16x32xbf16, #tpu.memory_space<vmem>>, %arg4: memref<32x32xbf16, #tpu.memory_space<vmem>>, %arg5: memref<1x32xf32, #tpu.memory_space<vmem>>, %arg6: memref<16x32xbf16, #tpu.memory_space<vmem>>, %arg7: memref<16x32xf32, #tpu.memory_space<vmem>>) attributes {dimension_semantics = [#tpu.dimension_semantics<parallel>, #tpu.dimension_semantics<parallel>, #tpu.dimension_semantics<arbitrary>], iteration_bounds = array<i64: 1, 1, 1>, scalar_prefetch = 0 : i64, scratch_operands = 1 : i64, tpu.core_type = #tpu.core_type<tc>, window_params = [{transform_indices = @transform_0, window_bounds = array<i64: 16, 32>}, {transform_indices = @transform_1, window_bounds = array<i64: 32, 32>}, {transform_indices = @transform_2, window_bounds = array<i64: 1, 32>}, {transform_indices = @transform_3, window_bounds = array<i64: 16, 32>}]} {
    %c0_i32 = arith.constant 0 : i32
    %0 = arith.cmpi eq, %arg2, %c0_i32 : i32
    %1 = arith.extui %0 : i1 to i32
    %c0_i32_0 = arith.constant 0 : i32
    %2 = arith.cmpi ne, %1, %c0_i32_0 : i32
    scf.if %2 {
      %cst_10 = arith.constant 0.000000e+00 : f32
      %12 = vector.broadcast %cst_10 : f32 to vector<16x32xf32>
      %c0_11 = arith.constant 0 : index
      %c0_12 = arith.constant 0 : index
      %13 = vector.load %arg7[%c0_11, %c0_12] : memref<16x32xf32, #tpu.memory_space<vmem>>, vector<16x32xf32>
      tpu.vector_store %arg7[%c0_11, %c0_12], %12 {strides = array<i32>} : memref<16x32xf32, #tpu.memory_space<vmem>>, vector<16x32xf32>,
    } else {
    }
    %c0 = arith.constant 0 : index
    %c0_1 = arith.constant 0 : index
    %3 = vector.load %arg7[%c0, %c0_1] : memref<16x32xf32, #tpu.memory_space<vmem>>, vector<16x32xf32>
    %c0_2 = arith.constant 0 : index
    %c0_3 = arith.constant 0 : index
    %4 = vector.load %arg3[%c0_2, %c0_3] : memref<16x32xbf16, #tpu.memory_space<vmem>>, vector<16x32xbf16>
    %c0_4 = arith.constant 0 : index
    %c0_5 = arith.constant 0 : index
    %5 = vector.load %arg4[%c0_4, %c0_5] : memref<32x32xbf16, #tpu.memory_space<vmem>>, vector<32x32xbf16>
    %cst = arith.constant dense<0.000000e+00> : vector<16x32xf32>
    %6 = tpu.matmul %4, %5, %cst {dimension_numbers = #tpu.dot_dimension_numbers<[1], [0], [0], [1], [0, 0, 1, 1], [], []>} : vector<16x32xbf16>, vector<32x32xbf16>, vector<16x32xf32> -> vector<16x32xf32>
    %7 = arith.addf %3, %6 : vector<16x32xf32>
    %c0_6 = arith.constant 0 : index
    %c0_7 = arith.constant 0 : index
    %8 = vector.load %arg7[%c0_6, %c0_7] : memref<16x32xf32, #tpu.memory_space<vmem>>, vector<16x32xf32>
    tpu.vector_store %arg7[%c0_6, %c0_7], %7 {strides = array<i32>} : memref<16x32xf32, #tpu.memory_space<vmem>>, vector<16x32xf32>,
    %c0_i32_8 = arith.constant 0 : i32
    %9 = arith.cmpi eq, %arg2, %c0_i32_8 : i32
    %10 = arith.extui %9 : i1 to i32
    %c0_i32_9 = arith.constant 0 : i32
    %11 = arith.cmpi ne, %10, %c0_i32_9 : i32
    scf.if %11 {
      %c0_10 = arith.constant 0 : index
      %c0_11 = arith.constant 0 : index
      %12 = vector.load %arg7[%c0_10, %c0_11] : memref<16x32xf32, #tpu.memory_space<vmem>>, vector<16x32xf32>
      %c0_12 = arith.constant 0 : index
      %c0_13 = arith.constant 0 : index
      %13 = vector.load %arg5[%c0_12, %c0_13] : memref<1x32xf32, #tpu.memory_space<vmem>>, vector<1x32xf32>
      %14 = vector.broadcast %13 : vector<1x32xf32> to vector<16x32xf32>
      %15 = arith.addf %12, %14 : vector<16x32xf32>
      %16 = arith.truncf %15 : vector<16x32xf32> to vector<16x32xbf16>
      %c0_14 = arith.constant 0 : index
      %c0_15 = arith.constant 0 : index
      %17 = vector.load %arg6[%c0_14, %c0_15] : memref<16x32xbf16, #tpu.memory_space<vmem>>, vector<16x32xbf16>
      tpu.vector_store %arg6[%c0_14, %c0_15], %16 {strides = array<i32>} : memref<16x32xbf16, #tpu.memory_space<vmem>>, vector<16x32xbf16>,
    } else {
    }
    return
  }
  func.func @transform_0(%arg0: i32, %arg1: i32, %arg2: i32) -> (i32, i32) {
    %c0_i32 = arith.constant 0 : i32
    return %arg0, %arg2 : i32, i32
  }
  func.func @transform_1(%arg0: i32, %arg1: i32, %arg2: i32) -> (i32, i32) {
    %c0_i32 = arith.constant 0 : i32
    return %arg2, %arg1 : i32, i32
  }
  func.func @transform_2(%arg0: i32, %arg1: i32, %arg2: i32) -> (i32, i32) {
    %c0_i32 = arith.constant 0 : i32
    %c0_i32_0 = arith.constant 0 : i32
    return %c0_i32, %arg1 : i32, i32
  }
  func.func @transform_3(%arg0: i32, %arg1: i32, %arg2: i32) -> (i32, i32) {
    %c0_i32 = arith.constant 0 : i32
    return %arg0, %arg1 : i32, i32
  }
}

</mosaic_0001>

<bundles_post_ra>
// kernel: tpu_custom_call.1
= control target key start
LH: loop header
LB: loop body
LE: loop exit
PB: predicated region body
PF: predicated region fallthrough
CT: control target
= control target key end

     0   :  { %8 = vsyncpa [#allocation4], 0  ;;  %s401_s0 = inlined_call_operand.hbm [shape: bf16[16,32], index: 0, kind: input, shape index: {}]   ;;  %s402_s1 = inlined_call_operand.hbm [shape: bf16[32,32], index: 1, kind: input, shape index: {}]   ;;  %s403_s2 = inlined_call_operand.hbm [shape: f32[1,32], index: 2, kind: input, shape index: {}]   ;;  %s404_s3 = inlined_call_operand.hbm [shape: bf16[16,32], index: 3, kind: output, shape index: {}]  }
   0x1   :  { %9 = vsyncpa [#allocation7], 0 }
   0x2   :  { %10 = vsyncpa [#allocation5], 0  ;;  %s304_s12 = smov [#allocation6]   ;;  %s305_s14 = smov [#allocation3]  }
   0x3   :  { %s28_s13 = sshll.u32 %s304_s12, 4  ;;  %s16_s15 = sshll.u32 %s305_s14, 4  ;;  %s29_s13 = int_to_ptr.vmem [resolvable:$true] %s28_s13  ;;  %s332_s15 = int_to_ptr.vmem [resolvable:$true] %s16_s15 }
   0x4   :  { %s210_s18 = scalar_lea.hbm %s402_s1, 256 }
   0x5   :  { %p211_p0 = scmp.ne.s32.totalorder %s402_s1, %s210_s18  ;;  %p214_p1 = scmp.lt.u32.totalorder %s210_s18, %s402_s1 }
   0x7   :  { %p216_p2 = pnand %p214_p1, %p211_p0 }
   0x9   :  { %219 = shalt.err (!%p216_p2)
}
   0xa   :  { %s220_s23 = scalar_lea.vmem %s29_s13, 256  ;;  %p225_p4 = scmp.lt.s32.totalorder %s29_s13, %s29_s13 }
   0xb   :  { %p221_p3 = scmp.ne.s32.totalorder %s29_s13, %s220_s23  ;;  %p226_p5 = scmp.lt.s32.totalorder %s220_s23, %s220_s23 }
   0xd   :  { %p227_p6 = por %p226_p5, %p225_p4 }
   0xf   :  { %p228_p7 = pnand %p227_p6, %p221_p3 }
  0x11   :  { %231 = shalt.err (!%p228_p7)
}
  0x12   :  { %s306_s24 = smov 64   ;;  %s307_s25 = smov 4  }
  0x13   :  { %34 = dma.hbm_to_vmem [thread:$0]  %s402_s1, 256, %s29_s13, [#allocation7], %s306_s24, %s306_s24, %s307_s25  }
  0x14   :  { %s232_s30 = scalar_lea.hbm %s401_s0, 128 }
  0x15   :  { %p233_p8 = scmp.ne.s32.totalorder %s401_s0, %s232_s30  ;;  %p236_p9 = scmp.lt.u32.totalorder %s232_s30, %s401_s0 }
  0x17   :  { %p238_p10 = pnand %p236_p9, %p233_p8 }
  0x19   :  { %241 = shalt.err (!%p238_p10)
}
  0x1a   :  { %s242_s8 = scalar_lea.vmem %s332_s15, 128  ;;  %p247_p12 = scmp.lt.s32.totalorder %s332_s15, %s332_s15 }
  0x1b   :  { %p243_p11 = scmp.ne.s32.totalorder %s332_s15, %s242_s8  ;;  %p248_p13 = scmp.lt.s32.totalorder %s242_s8, %s242_s8 }
  0x1d   :  { %p249_p0 = por %p248_p13, %p247_p12 }
  0x1f   :  { %p250_p1 = pnand %p249_p0, %p243_p11 }
  0x21   :  { %253 = shalt.err (!%p250_p1)
}
  0x22   :  { %22 = dma.hbm_to_vmem [thread:$0]  %s401_s0, 128, %s332_s15, [#allocation4], %s306_s24, %s306_s24, %s307_s25  }
  0x23   :  { %s308_s10 = smov [#allocation8]   ;;  %s254_s14 = scalar_lea.hbm %s403_s2, 16 }
  0x24   :  { %s41_s11 = sshll.u32 %s308_s10, 4  ;;  %p255_p2 = scmp.ne.s32.totalorder %s403_s2, %s254_s14  ;;  %s42_s11 = int_to_ptr.vmem [resolvable:$true] %s41_s11 }
  0x25   :  { %p258_p3 = scmp.lt.u32.totalorder %s254_s14, %s403_s2 }
  0x27   :  { %p260_p4 = pnand %p258_p3, %p255_p2 }
  0x29   :  { %263 = shalt.err (!%p260_p4)
}
  0x2a   :  { %s264_s20 = scalar_lea.vmem %s42_s11, 16  ;;  %s268_s0 = scalar_lea.vmem %s42_s11, 32 }
  0x2b   :  { %p265_p5 = scmp.ne.s32.totalorder %s42_s11, %s264_s20  ;;  %p269_p6 = scmp.lt.s32.totalorder %s42_s11, %s42_s11 }
  0x2c   :  { %p270_p7 = scmp.lt.s32.totalorder %s268_s0, %s264_s20 }
  0x2e   :  { %p271_p8 = por %p270_p7, %p269_p6 }
  0x30   :  { %p272_p9 = pnand %p271_p8, %p265_p5 }
  0x32   :  { %275 = shalt.err (!%p272_p9)
}
  0x33   :  { %44 = dma.hbm_to_vmem [thread:$0]  %s403_s2, 16, %s42_s11, [#allocation7]  }
  0x34   :  { %298 = dma.done.wait [#allocation4], 128  }
  0x35   :  { %299 = vsyncadd [#allocation4], 4294967168 }
  0x36   :  { %300 = dma.done.wait [#allocation7], 272  }
  0x37   :  { %301 = vsyncadd [#allocation7], 4294967024  ;;  %vm59_vm0 = vcmask 261120   ;;  %v309_v0 = vmov 0.0   ;;  %vm310_vm1 = vmmov 0   ;;  %v207_v1 = vld [vmem:[#allocation6] sm:$0xff]  }
  0x38   :  { %191 = vmatprep.subr.bf16.mxu0 %v309_v0  ;;  %195 = vmatprep.mubr.msk.bf16.mxu0 %vm310_vm1, %v309_v0  ;;  %60 = vst.msk [vmem:[#allocation2] sm:$0xff] %vm59_vm0, %v309_v0  ;;  %61 = vst.msk [vmem:[#allocation2 + $0x8] sm:$0xff] %vm59_vm0, %v309_v0  ;;  %v208_v2 = vld [vmem:[#allocation6 + $0x8] sm:$0xff]   ;;  %v209_v3 = vld [vmem:[#allocation3] sm:$0xff]   ;;  %vm158_vm2 = vcmask 257024   ;;  %s311_s2 = smov [#allocation9]  }
  0x39   :  { %192 = vmatpush3.bf16.msra.mxu0 %v207_v1  ;;  %v183_v12 = vld [vmem:[#allocation8] ss:$0 sm:$0xff]  ;;  %s166_s22 = sshll.u32 %s311_s2, 4  ;;  %s167_s22 = int_to_ptr.vmem [resolvable:$true] %s166_s22 }
  0x3a   :  { %193 = vmatprep.subr.bf16.mxu0 %v309_v0  ;;  %s276_s23 = scalar_lea.vmem %s167_s22, 128  ;;  %p281_p11 = scmp.lt.s32.totalorder %s167_s22, %s167_s22 }
  0x3b   :  { %p277_p10 = scmp.ne.s32.totalorder %s167_s22, %s276_s23  ;;  %p282_p12 = scmp.lt.s32.totalorder %s276_s23, %s276_s23 }
  0x3d   :  { %194 = vmatpush3.bf16.msra.mxu0 %v208_v2  ;;  %p283_p13 = por %p282_p12, %p281_p11 }
  0x3f   :  { %v62_v4 = vld [vmem:[#allocation2] sm:$0xff]  ;;  %v63_v6 = vld [vmem:[#allocation2 + $0x8] sm:$0xff]  ;;  %p284_p0 = pnand %p283_p13, %p277_p10 }
  0x40   :  { %196 = vmatmul.mubr.msk.bf16.vlgmr.msra.gmra.mrb[0].mxu0 %vm59_vm0, %v209_v3 }
 0x113   :  { %v125_v5 = vpop.f32.mrb[0].mxu0 }
 0x114   :  { %v132_v7 = vadd.f32 %v125_v5, %v62_v4  ;;  %v197_v8 = vpop.f32.mrb[1].mxu0 }
 0x115   :  { %v128_v9 = vpop.f32.mrb[2].mxu0 }
 0x116   :  { %134 = vst.msk [vmem:[#allocation2] sm:$0xff] %vm59_vm0, %v132_v7  ;;  %v133_v10 = vadd.f32 %v128_v9, %v63_v6  ;;  %v198_v11 = vpop.f32.mrb[3].mxu0 }
 0x118   :  { %135 = vst.msk [vmem:[#allocation2 + $0x8] sm:$0xff] %vm59_vm0, %v133_v10 }
 0x11d   :  { %v139_v13 = vld [vmem:[#allocation2] sm:$0xff] }
 0x11e   :  { %v148_v14 = vadd.f32 %v183_v12, %v139_v13 }
 0x11f   :  { %v140_v15 = vld [vmem:[#allocation2 + $0x8] sm:$0xff] }
 0x120   :  { %v149_v16 = vadd.f32 %v183_v12, %v140_v15  ;;  %v186_v17 = vpack.c.bf16 %v148_v14, %v148_v14 }
 0x122   :  { %v187_v18 = vpack.c.bf16 %v149_v16, %v149_v16  ;;  %159 = vst.msk [vmem:[#allocation9] sm:$0xf] %vm158_vm2, %v186_v17 }
 0x124   :  { %160 = vst.msk [vmem:[#allocation9 + $0x4] sm:$0xf] %vm158_vm2, %v187_v18 }
 0x125   :  { %287 = shalt.err (!%p284_p0)
}
 0x126   :  { %s288_s28 = scalar_lea.hbm %s404_s3, 128 }
 0x127   :  { %p289_p1 = scmp.ne.s32.totalorder %s404_s3, %s288_s28  ;;  %p292_p2 = scmp.lt.u32.totalorder %s288_s28, %s404_s3 }
 0x129   :  { %p294_p3 = pnand %p292_p2, %p289_p1 }
 0x12b   :  { %297 = shalt.err (!%p294_p3)
}
 0x12c   :  { %172 = dma.vmem_to_hbm [thread:$0]  %s167_s22, 128, %s404_s3, [#allocation5], %s306_s24, %s306_s24, %s307_s25  }
 0x12d   :  { %302 = dma.done.wait [#allocation5], 128  }
 0x12e   :  { %303 = vsyncadd [#allocation5], 4294967168 }
 0x12f   :  { %176 = vsyncpa [#allocation4], 1 }
 0x130   :  { %177 = vsyncpa [#allocation7], 1 }
 0x131   :  { %178 = vsyncpa [#allocation5], 1 }

</bundles_post_ra>
